<compile_context>
chip_gen: v6e
topology: v6e:2x2x1
jax: 0.10.0
libtpu: 0.0.40
codegen_flags: <defaults>
</compile_context>

<pallas_src>
import functools

import jax
import jax.numpy as jnp
import numpy as np
from jax.experimental import pallas as pl
from jax.experimental.pallas import tpu as pltpu

EPS = 1e-5
NEG_SLOPE = 0.3  # LeakyReLU(0.3)


def _leaky(x):
    return jnp.where(x >= 0.0, x, NEG_SLOPE * x)


# ----------------------------- Pallas kernel ------------------------------- #

def _make_fused_kernel(C, FC, M0, M1, n_taps, ppb_off):
    """Fused ResNet2d forward; all in-kernel tensors are (channels, positions)."""
    K1 = n_taps * C  # conv1 contraction size

    def kernel(pa_ref, w0t_ref, wcat_ref, p2_ref, pp_ref, o_ref, pcat_ref):
        # ---- stage A: conv0 on [stats columns | gathered columns] ----------
        # pa = (9C, M0 + n_taps*M1): first M0 columns give the full conv0
        # output (for BN0 batch stats); the remaining columns are the
        # reflect-pad + (sh+2)x(sw+2) im2col of that output, expressed as a
        # static gather of the conv0 *input* patch columns.
        zA = jnp.dot(w0t_ref[...], pa_ref[...],
                     preferred_element_type=jnp.float32)          # (C, M0+n_taps*M1)
        b0 = pp_ref[0:C, 0:1]
        g0 = pp_ref[0:C, 1:2]
        be0 = pp_ref[0:C, 2:3]
        zA = zA + b0

        z0 = zA[:, 0:M0]                                          # (C, M0)
        mu0 = jnp.mean(z0, axis=1, keepdims=True)                 # (C, 1)
        var0 = jnp.mean(z0 * z0, axis=1, keepdims=True) - mu0 * mu0  # one-pass
        scale0 = jax.lax.rsqrt(var0 + EPS) * g0
        shift0 = be0 - mu0 * scale0

        # BN0-affine + LeakyReLU only on the gathered columns (= patches of xa)
        act = _leaky(zA[:, M0:] * scale0 + shift0)                # (C, n_taps*M1)

        # ---- pack conv1 patches + conv2 (1x1) inputs into one K x M1 matrix -
        # (static sublane-offset stores into VMEM scratch; lane slices are
        #  128-aligned so there is no relayout on the lane axis)
        for t in range(n_taps):
            pcat_ref[t * C:(t + 1) * C, :] = act[:, t * M1:(t + 1) * M1]
        pcat_ref[K1:K1 + C, :] = p2_ref[...]

        # ---- stage B: fused conv1 / conv2 matmul (block-diagonal weight) ----
        zcat = jnp.dot(wcat_ref[...], pcat_ref[...],
                       preferred_element_type=jnp.float32)        # (2FC, M1)
        bB = pp_ref[ppb_off:ppb_off + 2 * FC, 0:1]
        gB = pp_ref[ppb_off:ppb_off + 2 * FC, 1:2]
        beB = pp_ref[ppb_off:ppb_off + 2 * FC, 2:3]
        zcat = zcat + bB

        # bn1 / bn2 together: per-row (= per-channel, per-branch) lane stats.
        mu = jnp.mean(zcat, axis=1, keepdims=True)
        var = jnp.mean(zcat * zcat, axis=1, keepdims=True) - mu * mu
        y = (zcat - mu) * jax.lax.rsqrt(var + EPS) * gB + beB

        # residual add (branch-1 rows + branch-2 rows) + LeakyReLU
        o_ref[...] = _leaky(y[0:FC, :] + y[FC:2 * FC, :])

    return kernel


# ------------------------------- JAX glue ---------------------------------- #

def _extract_patches_T(x_nhwc, kh, kw, sh, sw):
    # (N,H,W,C) -> (kh*kw*C, N*Ho*Wo); row order (di, dj, c), col order (n, io, jo).
    N, H, W, C = x_nhwc.shape
    Ho = (H - kh) // sh + 1
    Wo = (W - kw) // sw + 1
    cols = []
    for di in range(kh):
        for dj in range(kw):
            cols.append(x_nhwc[:, di:di + sh * Ho:sh, dj:dj + sw * Wo:sw, :])
    p = jnp.concatenate(cols, axis=-1).reshape(N * Ho * Wo, kh * kw * C)
    return p.T, (Ho, Wo)


def _w_as_matrix(w_oihw):
    # PyTorch (Cout, Cin, kh, kw) -> (kh*kw*Cin, Cout), row order (di, dj, ci).
    Co, Ci, kh, kw = w_oihw.shape
    return jnp.transpose(w_oihw, (2, 3, 1, 0)).reshape(kh * kw * Ci, Co)


def _reflect_np(i, size):
    i = np.where(i < 0, -i, i)
    return np.where(i >= size, 2 * (size - 1) - i, i)


def _gather_cols_idx(N, H, W, Ho, Wo, sh, sw, kh1, kw1, pad_t, pad_l):
    # Static column indices into the (.., N*H*W) conv0 output that reproduce
    # reflection-pad + kh1 x kw1 / stride im2col; order (tap, n, io, jo).
    n = np.arange(N)[:, None, None]
    io = np.arange(Ho)[None, :, None]
    jo = np.arange(Wo)[None, None, :]
    idx = []
    for di in range(kh1):
        for dj in range(kw1):
            i = _reflect_np(io * sh + di - pad_t, H)
            j = _reflect_np(jo * sw + dj - pad_l, W)
            idx.append(((n * H + i) * W + j).reshape(-1))
    return np.concatenate(idx).astype(np.int32)


def resnet2d_forward(x_nchw, params, stride):
    sh, sw = stride
    N, C, H, W = x_nchw.shape
    FC = params['w1'].shape[0]
    kh1, kw1 = sh + 2, sw + 2
    pad_t, pad_b = (sh + 1) // 2, (sh + 2) // 2
    pad_l, pad_r = (sw + 1) // 2, (sw + 2) // 2
    Ho = (H + pad_t + pad_b - kh1) // sh + 1
    Wo = (W + pad_l + pad_r - kw1) // sw + 1
    M0, M1 = N * H * W, N * Ho * Wo
    n_taps = kh1 * kw1
    K1 = n_taps * C
    ppb_off = ((C + 7) // 8) * 8          # 8-aligned row offset of stage-B params

    x = jnp.transpose(x_nchw, (0, 2, 3, 1))                       # NHWC

    # conv0 'same' zero-pad patches, transposed: (9C, M0)
    x_zp = jnp.pad(x, ((0, 0), (1, 1), (1, 1), (0, 0)))
    p0, _ = _extract_patches_T(x_zp, 3, 3, 1, 1)

    # append gathered columns (static indices) -> (9C, M0 + n_taps*M1)
    idx = _gather_cols_idx(N, H, W, Ho, Wo, sh, sw, kh1, kw1, pad_t, pad_l)
    pa = jnp.concatenate([p0, jnp.take(p0, jnp.asarray(idx), axis=1)], axis=1)

    # 1x1 strided shortcut inputs, transposed: (C, M1)
    p2, _ = _extract_patches_T(x, 1, 1, sh, sw)

    # transposed weights + block-diagonal fused stage-B weight
    w0t = _w_as_matrix(params['w0']).T                            # (C, 9C)
    w1t = _w_as_matrix(params['w1']).T                            # (FC, K1)
    w2t = _w_as_matrix(params['w2']).T                            # (FC, C)
    wcat = jnp.concatenate([
        jnp.concatenate([w1t, jnp.zeros((FC, C), jnp.float32)], axis=1),
        jnp.concatenate([jnp.zeros((FC, K1), jnp.float32), w2t], axis=1)],
        axis=0)                                                   # (2FC, K1+C)

    # packed per-channel parameters: one small DMA instead of eight tiny ones.
    ppA = jnp.stack([params['b0'], params['g0'], params['be0']], axis=1)
    ppB = jnp.stack([jnp.concatenate([params['b1'], params['b2']]),
                     jnp.concatenate([params['g1'], params['g2']]),
                     jnp.concatenate([params['be1'], params['be2']])], axis=1)
    pp = (jnp.zeros((ppb_off + 2 * FC, 3), jnp.float32)
          .at[:C, :].set(ppA).at[ppb_off:, :].set(ppB))

    kernel = _make_fused_kernel(C, FC, M0, M1, n_taps, ppb_off)
    out = pl.pallas_call(
        kernel,
        out_shape=jax.ShapeDtypeStruct((FC, M1), jnp.float32),    # lane-dense (8,128)
        in_specs=[pl.BlockSpec(memory_space=pltpu.MemorySpace.VMEM)] * 5,
        out_specs=pl.BlockSpec(memory_space=pltpu.MemorySpace.VMEM),
        scratch_shapes=[pltpu.VMEM((K1 + C, M1), jnp.float32)],
    )(pa, w0t, wcat, p2, pp)

    out = out.reshape(FC, N, Ho, Wo)
    return jnp.transpose(out, (1, 0, 2, 3))                       # back to NCHW


# --------------------------- params & reference ----------------------------- #

def init_params(key, n_channels, factor, stride):
    sh, sw = stride
    C, FC = n_channels, factor * n_channels
    ks = jax.random.split(key, 12)

    def u(k, shape, fan_in):
        bound = 1.0 / np.sqrt(fan_in)
        return jax.random.uniform(k, shape, jnp.float32, -bound, bound)

    return {
        'w0': u(ks[0], (C, C, 3, 3), C * 9),
        'b0': u(ks[1], (C,), C * 9),
        'g0': 1.0 + 0.1 * jax.random.normal(ks[2], (C,), jnp.float32),
        'be0': 0.1 * jax.random.normal(ks[3], (C,), jnp.float32),
        'w1': u(ks[4], (FC, C, sh + 2, sw + 2), C * (sh + 2) * (sw + 2)),
        'b1': u(ks[5], (FC,), C * (sh + 2) * (sw + 2)),
        'g1': 1.0 + 0.1 * jax.random.normal(ks[6], (FC,), jnp.float32),
        'be1': 0.1 * jax.random.normal(ks[7], (FC,), jnp.float32),
        'w2': u(ks[8], (FC, C, 1, 1), C),
        'b2': u(ks[9], (FC,), C),
        'g2': 1.0 + 0.1 * jax.random.normal(ks[10], (FC,), jnp.float32),
        'be2': 0.1 * jax.random.normal(ks[11], (FC,), jnp.float32),
    }


def reference_forward(x_nchw, params, stride):
    # Pure-JAX reference (mirrors the PyTorch forward), for a runtime self-check.
    sh, sw = stride
    prec = jax.lax.Precision.HIGHEST

    def conv(x, w, b, strides, padding):
        y = jax.lax.conv_general_dilated(
            x, w, window_strides=strides, padding=padding,
            dimension_numbers=('NCHW', 'OIHW', 'NCHW'), precision=prec)
        return y + b[None, :, None, None]

    def bn(x, g, b):
        mu = jnp.mean(x, axis=(0, 2, 3), keepdims=True)
        var = jnp.mean((x - mu) ** 2, axis=(0, 2, 3), keepdims=True)
        return (x - mu) * jax.lax.rsqrt(var + EPS) * g[None, :, None, None] \
            + b[None, :, None, None]

    act = lambda v: jnp.where(v >= 0.0, v, NEG_SLOPE * v)

    x = act(bn(conv(x_nchw, params['w0'], params['b0'], (1, 1), ((1, 1), (1, 1))),
               params['g0'], params['be0']))
    x = jnp.pad(x, ((0, 0), (0, 0),
                    ((sh + 1) // 2, (sh + 2) // 2),
                    ((sw + 1) // 2, (sw + 2) // 2)), mode='reflect')
    x = bn(conv(x, params['w1'], params['b1'], (sh, sw), 'VALID'),
           params['g1'], params['be1'])
    y = bn(conv(x_nchw, params['w2'], params['b2'], (sh, sw), 'VALID'),
           params['g2'], params['be2'])
    return act(x + y)


# ---------------------------------- main ------------------------------------ #

if __name__ == "__main__":
    n_channels, factor, stride = 4, 2, (2, 2)

    key = jax.random.PRNGKey(0)
    kx, kp = jax.random.split(key)
    x = jax.random.normal(kx, (2, n_channels, 16, 16), jnp.float32)
    params = init_params(kp, n_channels, factor, stride)

    fwd = jax.jit(functools.partial(resnet2d_forward, stride=stride))
    out = jax.block_until_ready(fwd(x, params))

    assert out.shape == (2, factor * n_channels, 8, 8), out.shape

    ref = jax.block_until_ready(reference_forward(x, params, stride))
    max_err = float(jnp.max(jnp.abs(out - ref)))
    assert max_err < 2e-2, f"max abs err {max_err}"

    print("KERNEL_OK")
</pallas_src>

<mosaic_0001>
module attributes {stable_mosaic.version = 11 : i64} {
  func.func @kernel(%arg0: memref<36x2560xf32, #tpu.memory_space<vmem>>, %arg1: memref<4x36xf32, #tpu.memory_space<vmem>>, %arg2: memref<16x68xf32, #tpu.memory_space<vmem>>, %arg3: memref<4x128xf32, #tpu.memory_space<vmem>>, %arg4: memref<24x3xf32, #tpu.memory_space<vmem>>, %arg5: memref<8x128xf32, #tpu.memory_space<vmem>>, %arg6: memref<68x128xf32, #tpu.memory_space<vmem>>) attributes {dimension_semantics = [], scalar_prefetch = 0 : i64, scratch_operands = 1 : i64, tpu.core_type = #tpu.core_type<tc>} {
    %c0 = arith.constant 0 : index
    %c0_0 = arith.constant 0 : index
    %0 = vector.load %arg1[%c0, %c0_0] : memref<4x36xf32, #tpu.memory_space<vmem>>, vector<4x36xf32>
    %c0_1 = arith.constant 0 : index
    %c0_2 = arith.constant 0 : index
    %1 = vector.load %arg0[%c0_1, %c0_2] : memref<36x2560xf32, #tpu.memory_space<vmem>>, vector<36x2560xf32>
    %cst = arith.constant dense<0.000000e+00> : vector<4x2560xf32>
    %2 = tpu.matmul %0, %1, %cst {dimension_numbers = #tpu.dot_dimension_numbers<[1], [0], [0], [1], [0, 0, 1, 1], [], []>} : vector<4x36xf32>, vector<36x2560xf32>, vector<4x2560xf32> -> vector<4x2560xf32>
    %c0_3 = arith.constant 0 : index
    %c0_4 = arith.constant 0 : index
    %3 = vector.load %arg4[%c0_3, %c0_4] : memref<24x3xf32, #tpu.memory_space<vmem>>, vector<4x1xf32>
    %c0_5 = arith.constant 0 : index
    %c1 = arith.constant 1 : index
    %4 = vector.load %arg4[%c0_5, %c1] : memref<24x3xf32, #tpu.memory_space<vmem>>, vector<4x1xf32>
    %c0_6 = arith.constant 0 : index
    %c2 = arith.constant 2 : index
    %5 = vector.load %arg4[%c0_6, %c2] : memref<24x3xf32, #tpu.memory_space<vmem>>, vector<4x1xf32>
    %6 = vector.broadcast %3 : vector<4x1xf32> to vector<4x2560xf32>
    %7 = arith.addf %2, %6 : vector<4x2560xf32>
    %8 = vector.extract_strided_slice %7 {offsets = [0, 0], sizes = [4, 512], strides = [1, 1]} : vector<4x2560xf32> to vector<4x512xf32>
    %cst_7 = arith.constant dense<0.000000e+00> : vector<4xf32>
    %9 = vector.multi_reduction <add>, %8, %cst_7 [1] : vector<4x512xf32> to vector<4xf32>
    %10 = vector.shape_cast %9 : vector<4xf32> to vector<4x1xf32>
    %cst_8 = arith.constant 5.120000e+02 : f32
    %11 = vector.broadcast %cst_8 : f32 to vector<4x1xf32>
    %12 = arith.divf %10, %11 : vector<4x1xf32>
    %13 = arith.mulf %8, %8 : vector<4x512xf32>
    %cst_9 = arith.constant dense<0.000000e+00> : vector<4xf32>
    %14 = vector.multi_reduction <add>, %13, %cst_9 [1] : vector<4x512xf32> to vector<4xf32>
    %15 = vector.shape_cast %14 : vector<4xf32> to vector<4x1xf32>
    %cst_10 = arith.constant 5.120000e+02 : f32
    %16 = vector.broadcast %cst_10 : f32 to vector<4x1xf32>
    %17 = arith.divf %15, %16 : vector<4x1xf32>
    %18 = arith.mulf %12, %12 : vector<4x1xf32>
    %19 = arith.subf %17, %18 : vector<4x1xf32>
    %cst_11 = arith.constant 9.99999974E-6 : f32
    %20 = vector.broadcast %cst_11 : f32 to vector<4x1xf32>
    %21 = arith.addf %19, %20 : vector<4x1xf32>
    %22 = math.rsqrt %21 : vector<4x1xf32>
    %23 = arith.mulf %22, %4 : vector<4x1xf32>
    %24 = arith.mulf %12, %23 : vector<4x1xf32>
    %25 = arith.subf %5, %24 : vector<4x1xf32>
    %26 = vector.extract_strided_slice %7 {offsets = [0, 512], sizes = [4, 2048], strides = [1, 1]} : vector<4x2560xf32> to vector<4x2048xf32>
    %27 = vector.broadcast %23 : vector<4x1xf32> to vector<4x2048xf32>
    %28 = arith.mulf %26, %27 : vector<4x2048xf32>
    %29 = vector.broadcast %25 : vector<4x1xf32> to vector<4x2048xf32>
    %30 = arith.addf %28, %29 : vector<4x2048xf32>
    %cst_12 = arith.constant 0.000000e+00 : f32
    %31 = vector.broadcast %cst_12 : f32 to vector<4x2048xf32>
    %32 = arith.cmpf oge, %30, %31 : vector<4x2048xf32>
    %cst_13 = arith.constant 3.000000e-01 : f32
    %33 = vector.broadcast %cst_13 : f32 to vector<4x2048xf32>
    %34 = arith.mulf %33, %30 : vector<4x2048xf32>
    %35 = arith.select %32, %30, %34 : vector<4x2048xi1>, vector<4x2048xf32>
    %36 = vector.extract_strided_slice %35 {offsets = [0, 0], sizes = [4, 128], strides = [1, 1]} : vector<4x2048xf32> to vector<4x128xf32>
    %c0_14 = arith.constant 0 : index
    %c0_15 = arith.constant 0 : index
    %37 = vector.load %arg6[%c0_14, %c0_15] : memref<68x128xf32, #tpu.memory_space<vmem>>, vector<4x128xf32>
    tpu.vector_store %arg6[%c0_14, %c0_15], %36 {strides = array<i32>} : memref<68x128xf32, #tpu.memory_space<vmem>>, vector<4x128xf32>,
    %38 = vector.extract_strided_slice %35 {offsets = [0, 128], sizes = [4, 128], strides = [1, 1]} : vector<4x2048xf32> to vector<4x128xf32>
    %c4 = arith.constant 4 : index
    %c0_16 = arith.constant 0 : index
    %39 = vector.load %arg6[%c4, %c0_16] : memref<68x128xf32, #tpu.memory_space<vmem>>, vector<4x128xf32>
    tpu.vector_store %arg6[%c4, %c0_16], %38 {strides = array<i32>} : memref<68x128xf32, #tpu.memory_space<vmem>>, vector<4x128xf32>,
    %40 = vector.extract_strided_slice %35 {offsets = [0, 256], sizes = [4, 128], strides = [1, 1]} : vector<4x2048xf32> to vector<4x128xf32>
    %c8 = arith.constant 8 : index
    %c0_17 = arith.constant 0 : index
    %41 = vector.load %arg6[%c8, %c0_17] : memref<68x128xf32, #tpu.memory_space<vmem>>, vector<4x128xf32>
    tpu.vector_store %arg6[%c8, %c0_17], %40 {strides = array<i32>} : memref<68x128xf32, #tpu.memory_space<vmem>>, vector<4x128xf32>,
    %42 = vector.extract_strided_slice %35 {offsets = [0, 384], sizes = [4, 128], strides = [1, 1]} : vector<4x2048xf32> to vector<4x128xf32>
    %c12 = arith.constant 12 : index
    %c0_18 = arith.constant 0 : index
    %43 = vector.load %arg6[%c12, %c0_18] : memref<68x128xf32, #tpu.memory_space<vmem>>, vector<4x128xf32>
    tpu.vector_store %arg6[%c12, %c0_18], %42 {strides = array<i32>} : memref<68x128xf32, #tpu.memory_space<vmem>>, vector<4x128xf32>,
    %44 = vector.extract_strided_slice %35 {offsets = [0, 512], sizes = [4, 128], strides = [1, 1]} : vector<4x2048xf32> to vector<4x128xf32>
    %c16 = arith.constant 16 : index
    %c0_19 = arith.constant 0 : index
    %45 = vector.load %arg6[%c16, %c0_19] : memref<68x128xf32, #tpu.memory_space<vmem>>, vector<4x128xf32>
    tpu.vector_store %arg6[%c16, %c0_19], %44 {strides = array<i32>} : memref<68x128xf32, #tpu.memory_space<vmem>>, vector<4x128xf32>,
    %46 = vector.extract_strided_slice %35 {offsets = [0, 640], sizes = [4, 128], strides = [1, 1]} : vector<4x2048xf32> to vector<4x128xf32>
    %c20 = arith.constant 20 : index
    %c0_20 = arith.constant 0 : index
    %47 = vector.load %arg6[%c20, %c0_20] : memref<68x128xf32, #tpu.memory_space<vmem>>, vector<4x128xf32>
    tpu.vector_store %arg6[%c20, %c0_20], %46 {strides = array<i32>} : memref<68x128xf32, #tpu.memory_space<vmem>>, vector<4x128xf32>,
    %48 = vector.extract_strided_slice %35 {offsets = [0, 768], sizes = [4, 128], strides = [1, 1]} : vector<4x2048xf32> to vector<4x128xf32>
    %c24 = arith.constant 24 : index
    %c0_21 = arith.constant 0 : index
    %49 = vector.load %arg6[%c24, %c0_21] : memref<68x128xf32, #tpu.memory_space<vmem>>, vector<4x128xf32>
    tpu.vector_store %arg6[%c24, %c0_21], %48 {strides = array<i32>} : memref<68x128xf32, #tpu.memory_space<vmem>>, vector<4x128xf32>,
    %50 = vector.extract_strided_slice %35 {offsets = [0, 896], sizes = [4, 128], strides = [1, 1]} : vector<4x2048xf32> to vector<4x128xf32>
    %c28 = arith.constant 28 : index
    %c0_22 = arith.constant 0 : index
    %51 = vector.load %arg6[%c28, %c0_22] : memref<68x128xf32, #tpu.memory_space<vmem>>, vector<4x128xf32>
    tpu.vector_store %arg6[%c28, %c0_22], %50 {strides = array<i32>} : memref<68x128xf32, #tpu.memory_space<vmem>>, vector<4x128xf32>,
    %52 = vector.extract_strided_slice %35 {offsets = [0, 1024], sizes = [4, 128], strides = [1, 1]} : vector<4x2048xf32> to vector<4x128xf32>
    %c32 = arith.constant 32 : index
    %c0_23 = arith.constant 0 : index
    %53 = vector.load %arg6[%c32, %c0_23] : memref<68x128xf32, #tpu.memory_space<vmem>>, vector<4x128xf32>
    tpu.vector_store %arg6[%c32, %c0_23], %52 {strides = array<i32>} : memref<68x128xf32, #tpu.memory_space<vmem>>, vector<4x128xf32>,
    %54 = vector.extract_strided_slice %35 {offsets = [0, 1152], sizes = [4, 128], strides = [1, 1]} : vector<4x2048xf32> to vector<4x128xf32>
    %c36 = arith.constant 36 : index
    %c0_24 = arith.constant 0 : index
    %55 = vector.load %arg6[%c36, %c0_24] : memref<68x128xf32, #tpu.memory_space<vmem>>, vector<4x128xf32>
    tpu.vector_store %arg6[%c36, %c0_24], %54 {strides = array<i32>} : memref<68x128xf32, #tpu.memory_space<vmem>>, vector<4x128xf32>,
    %56 = vector.extract_strided_slice %35 {offsets = [0, 1280], sizes = [4, 128], strides = [1, 1]} : vector<4x2048xf32> to vector<4x128xf32>
    %c40 = arith.constant 40 : index
    %c0_25 = arith.constant 0 : index
    %57 = vector.load %arg6[%c40, %c0_25] : memref<68x128xf32, #tpu.memory_space<vmem>>, vector<4x128xf32>
    tpu.vector_store %arg6[%c40, %c0_25], %56 {strides = array<i32>} : memref<68x128xf32, #tpu.memory_space<vmem>>, vector<4x128xf32>,
    %58 = vector.extract_strided_slice %35 {offsets = [0, 1408], sizes = [4, 128], strides = [1, 1]} : vector<4x2048xf32> to vector<4x128xf32>
    %c44 = arith.constant 44 : index
    %c0_26 = arith.constant 0 : index
    %59 = vector.load %arg6[%c44, %c0_26] : memref<68x128xf32, #tpu.memory_space<vmem>>, vector<4x128xf32>
    tpu.vector_store %arg6[%c44, %c0_26], %58 {strides = array<i32>} : memref<68x128xf32, #tpu.memory_space<vmem>>, vector<4x128xf32>,
    %60 = vector.extract_strided_slice %35 {offsets = [0, 1536], sizes = [4, 128], strides = [1, 1]} : vector<4x2048xf32> to vector<4x128xf32>
    %c48 = arith.constant 48 : index
    %c0_27 = arith.constant 0 : index
    %61 = vector.load %arg6[%c48, %c0_27] : memref<68x128xf32, #tpu.memory_space<vmem>>, vector<4x128xf32>
    tpu.vector_store %arg6[%c48, %c0_27], %60 {strides = array<i32>} : memref<68x128xf32, #tpu.memory_space<vmem>>, vector<4x128xf32>,
    %62 = vector.extract_strided_slice %35 {offsets = [0, 1664], sizes = [4, 128], strides = [1, 1]} : vector<4x2048xf32> to vector<4x128xf32>
    %c52 = arith.constant 52 : index
    %c0_28 = arith.constant 0 : index
    %63 = vector.load %arg6[%c52, %c0_28] : memref<68x128xf32, #tpu.memory_space<vmem>>, vector<4x128xf32>
    tpu.vector_store %arg6[%c52, %c0_28], %62 {strides = array<i32>} : memref<68x128xf32, #tpu.memory_space<vmem>>, vector<4x128xf32>,
    %64 = vector.extract_strided_slice %35 {offsets = [0, 1792], sizes = [4, 128], strides = [1, 1]} : vector<4x2048xf32> to vector<4x128xf32>
    %c56 = arith.constant 56 : index
    %c0_29 = arith.constant 0 : index
    %65 = vector.load %arg6[%c56, %c0_29] : memref<68x128xf32, #tpu.memory_space<vmem>>, vector<4x128xf32>
    tpu.vector_store %arg6[%c56, %c0_29], %64 {strides = array<i32>} : memref<68x128xf32, #tpu.memory_space<vmem>>, vector<4x128xf32>,
    %66 = vector.extract_strided_slice %35 {offsets = [0, 1920], sizes = [4, 128], strides = [1, 1]} : vector<4x2048xf32> to vector<4x128xf32>
    %c60 = arith.constant 60 : index
    %c0_30 = arith.constant 0 : index
    %67 = vector.load %arg6[%c60, %c0_30] : memref<68x128xf32, #tpu.memory_space<vmem>>, vector<4x128xf32>
    tpu.vector_store %arg6[%c60, %c0_30], %66 {strides = array<i32>} : memref<68x128xf32, #tpu.memory_space<vmem>>, vector<4x128xf32>,
    %c0_31 = arith.constant 0 : index
    %c0_32 = arith.constant 0 : index
    %68 = vector.load %arg3[%c0_31, %c0_32] : memref<4x128xf32, #tpu.memory_space<vmem>>, vector<4x128xf32>
    %c64 = arith.constant 64 : index
    %c0_33 = arith.constant 0 : index
    %69 = vector.load %arg6[%c64, %c0_33] : memref<68x128xf32, #tpu.memory_space<vmem>>, vector<4x128xf32>
    tpu.vector_store %arg6[%c64, %c0_33], %68 {strides = array<i32>} : memref<68x128xf32, #tpu.memory_space<vmem>>, vector<4x128xf32>,
    %c0_34 = arith.constant 0 : index
    %c0_35 = arith.constant 0 : index
    %70 = vector.load %arg2[%c0_34, %c0_35] : memref<16x68xf32, #tpu.memory_space<vmem>>, vector<16x68xf32>
    %c0_36 = arith.constant 0 : index
    %c0_37 = arith.constant 0 : index
    %71 = vector.load %arg6[%c0_36, %c0_37] : memref<68x128xf32, #tpu.memory_space<vmem>>, vector<68x128xf32>
    %cst_38 = arith.constant dense<0.000000e+00> : vector<16x128xf32>
    %72 = tpu.matmul %70, %71, %cst_38 {dimension_numbers = #tpu.dot_dimension_numbers<[1], [0], [0], [1], [0, 0, 1, 1], [], []>} : vector<16x68xf32>, vector<68x128xf32>, vector<16x128xf32> -> vector<16x128xf32>
    %c8_39 = arith.constant 8 : index
    %c0_40 = arith.constant 0 : index
    %73 = vector.load %arg4[%c8_39, %c0_40] : memref<24x3xf32, #tpu.memory_space<vmem>>, vector<16x1xf32>
    %c8_41 = arith.constant 8 : index
    %c1_42 = arith.constant 1 : index
    %74 = vector.load %arg4[%c8_41, %c1_42] : memref<24x3xf32, #tpu.memory_space<vmem>>, vector<16x1xf32>
    %c8_43 = arith.constant 8 : index
    %c2_44 = arith.constant 2 : index
    %75 = vector.load %arg4[%c8_43, %c2_44] : memref<24x3xf32, #tpu.memory_space<vmem>>, vector<16x1xf32>
    %76 = vector.broadcast %73 : vector<16x1xf32> to vector<16x128xf32>
    %77 = arith.addf %72, %76 : vector<16x128xf32>
    %cst_45 = arith.constant dense<0.000000e+00> : vector<16xf32>
    %78 = vector.multi_reduction <add>, %77, %cst_45 [1] : vector<16x128xf32> to vector<16xf32>
    %79 = vector.shape_cast %78 : vector<16xf32> to vector<16x1xf32>
    %cst_46 = arith.constant 1.280000e+02 : f32
    %80 = vector.broadcast %cst_46 : f32 to vector<16x1xf32>
    %81 = arith.divf %79, %80 : vector<16x1xf32>
    %82 = arith.mulf %77, %77 : vector<16x128xf32>
    %cst_47 = arith.constant dense<0.000000e+00> : vector<16xf32>
    %83 = vector.multi_reduction <add>, %82, %cst_47 [1] : vector<16x128xf32> to vector<16xf32>
    %84 = vector.shape_cast %83 : vector<16xf32> to vector<16x1xf32>
    %cst_48 = arith.constant 1.280000e+02 : f32
    %85 = vector.broadcast %cst_48 : f32 to vector<16x1xf32>
    %86 = arith.divf %84, %85 : vector<16x1xf32>
    %87 = arith.mulf %81, %81 : vector<16x1xf32>
    %88 = arith.subf %86, %87 : vector<16x1xf32>
    %89 = vector.broadcast %81 : vector<16x1xf32> to vector<16x128xf32>
    %90 = arith.subf %77, %89 : vector<16x128xf32>
    %cst_49 = arith.constant 9.99999974E-6 : f32
    %91 = vector.broadcast %cst_49 : f32 to vector<16x1xf32>
    %92 = arith.addf %88, %91 : vector<16x1xf32>
    %93 = math.rsqrt %92 : vector<16x1xf32>
    %94 = vector.broadcast %93 : vector<16x1xf32> to vector<16x128xf32>
    %95 = arith.mulf %90, %94 : vector<16x128xf32>
    %96 = vector.broadcast %74 : vector<16x1xf32> to vector<16x128xf32>
    %97 = arith.mulf %95, %96 : vector<16x128xf32>
    %98 = vector.broadcast %75 : vector<16x1xf32> to vector<16x128xf32>
    %99 = arith.addf %97, %98 : vector<16x128xf32>
    %100 = vector.extract_strided_slice %99 {offsets = [0, 0], sizes = [8, 128], strides = [1, 1]} : vector<16x128xf32> to vector<8x128xf32>
    %101 = vector.extract_strided_slice %99 {offsets = [8, 0], sizes = [8, 128], strides = [1, 1]} : vector<16x128xf32> to vector<8x128xf32>
    %102 = arith.addf %100, %101 : vector<8x128xf32>
    %cst_50 = arith.constant 0.000000e+00 : f32
    %103 = vector.broadcast %cst_50 : f32 to vector<8x128xf32>
    %104 = arith.cmpf oge, %102, %103 : vector<8x128xf32>
    %cst_51 = arith.constant 3.000000e-01 : f32
    %105 = vector.broadcast %cst_51 : f32 to vector<8x128xf32>
    %106 = arith.mulf %105, %102 : vector<8x128xf32>
    %107 = arith.select %104, %102, %106 : vector<8x128xi1>, vector<8x128xf32>
    %c0_52 = arith.constant 0 : index
    %c0_53 = arith.constant 0 : index
    %108 = vector.load %arg5[%c0_52, %c0_53] : memref<8x128xf32, #tpu.memory_space<vmem>>, vector<8x128xf32>
    tpu.vector_store %arg5[%c0_52, %c0_53], %107 {strides = array<i32>} : memref<8x128xf32, #tpu.memory_space<vmem>>, vector<8x128xf32>,
    return
  }
}

</mosaic_0001>

<bundles_post_ra>
// kernel: resnet2d_forward.1
= control target key start
LH: loop header
LB: loop body
LE: loop exit
PB: predicated region body
PF: predicated region fallthrough
CT: control target
= control target key end

     0   :  { %vm131_vm0 = vcmask 1043456   ;;  %v1294_v3 = vmov 0.0   ;;  %vm127_vm1 = vcmask 293888   ;;  %vm1069_vm2 = vcmask 556032   ;;  %s1780_s0 = inlined_call_operand.vmem [shape: f32[36,2560], index: 0, kind: input, shape index: {}]   ;;  %s1781_s1 = inlined_call_operand.vmem [shape: f32[4,36], index: 1, kind: input, shape index: {}]   ;;  %s1782_s4 = inlined_call_operand.vmem [shape: f32[24,3], index: 4, kind: input, shape index: {}]   ;;  %s1783_s3 = inlined_call_operand.vmem [shape: f32[4,128], index: 3, kind: input, shape index: {}]   ;;  %s1784_s2 = inlined_call_operand.vmem [shape: f32[16,68], index: 2, kind: input, shape index: {}]   ;;  %s1785_s5 = inlined_call_operand.vmem [shape: f32[8,128], index: 5, kind: output, shape index: {}]  }
   0x1   :  { %v102_v0 = vld [vmem:[%s1780_s0 + $0x288] sm:$0xf]  ;;  %v101_v2 = vld [vmem:[%s1780_s0 + $0x280] sm:$0xf]  ;;  %256 = vmatprep.mubr.f32.mxu1 %v1294_v3  ;;  %398 = vmatprep.mubr.f32.mxu0 %v1294_v3  ;;  %v104_v22 = vld [vmem:[%s1780_s0 + $0x298] sm:$0xf] }
   0x2   :  { %v106_v1 = vld [vmem:[%s1780_s0 + $0x2a8] sm:$0xf]  ;;  %1210 = vmatprep.subr.msk.mxu1 %vm131_vm0, %v102_v0  ;;  %v105_v4 = vld [vmem:[%s1780_s0 + $0x2a0] sm:$0xf]  ;;  %v103_v24 = vld [vmem:[%s1780_s0 + $0x290] sm:$0xf] }
   0x3   :  { %1216 = vmatprep.subr.msk.mxu0 %vm131_vm0, %v106_v1  ;;  %v82_v5 = vld [vmem:[%s1780_s0 + $0x1e8] sm:$0xff]  ;;  %1211 = vmatpush1.msk.msra.mxu1 %vm131_vm0, %v101_v2  ;;  %v81_v7 = vld [vmem:[%s1780_s0 + $0x1e0] sm:$0xff]  ;;  %v84_v25 = vld [vmem:[%s1780_s0 + $0x1f8] sm:$0xff] }
   0x4   :  { %v86_v6 = vld [vmem:[%s1780_s0 + $0x208] sm:$0xff]  ;;  %1217 = vmatpush1.msk.msra.mxu0 %vm131_vm0, %v105_v4  ;;  %v85_v8 = vld [vmem:[%s1780_s0 + $0x200] sm:$0xff]  ;;  %216 = vmatprep.subr.mxu1 %v82_v5  ;;  %v83_v27 = vld [vmem:[%s1780_s0 + $0x1f0] sm:$0xff] }
   0x5   :  { %v62_v9 = vld [vmem:[%s1780_s0 + $0x148] sm:$0xff]  ;;  %358 = vmatprep.subr.mxu0 %v86_v6  ;;  %v61_v11 = vld [vmem:[%s1780_s0 + $0x140] sm:$0xff]  ;;  %217 = vmatpush1.msra.mxu1 %v81_v7  ;;  %v64_v29 = vld [vmem:[%s1780_s0 + $0x158] sm:$0xff] }
   0x6   :  { %v66_v10 = vld [vmem:[%s1780_s0 + $0x168] sm:$0xff]  ;;  %v65_v12 = vld [vmem:[%s1780_s0 + $0x160] sm:$0xff]  ;;  %359 = vmatpush1.msra.mxu0 %v85_v8  ;;  %218 = vmatprep.subr.mxu1 %v62_v9  ;;  %v63_v31 = vld [vmem:[%s1780_s0 + $0x150] sm:$0xff] }
   0x7   :  { %v42_v13 = vld [vmem:[%s1780_s0 + $0xa8] sm:$0xff]  ;;  %360 = vmatprep.subr.mxu0 %v66_v10  ;;  %v41_v15 = vld [vmem:[%s1780_s0 + $0xa0] sm:$0xff]  ;;  %219 = vmatpush1.msra.mxu1 %v61_v11  ;;  %v44_v33 = vld [vmem:[%s1780_s0 + $0xb8] sm:$0xff] }
   0x8   :  { %v46_v14 = vld [vmem:[%s1780_s0 + $0xc8] sm:$0xff]  ;;  %v45_v16 = vld [vmem:[%s1780_s0 + $0xc0] sm:$0xff]  ;;  %361 = vmatpush1.msra.mxu0 %v65_v12  ;;  %220 = vmatprep.subr.mxu1 %v42_v13  ;;  %v43_v35 = vld [vmem:[%s1780_s0 + $0xb0] sm:$0xff] }
   0x9   :  { %v22_v17 = vld [vmem:[%s1780_s0 + $0x8] sm:$0xff]  ;;  %362 = vmatprep.subr.mxu0 %v46_v14  ;;  %v21_v19 = vld [vmem:[%s1780_s0] sm:$0xff]  ;;  %221 = vmatpush1.msra.mxu1 %v41_v15  ;;  %v24_v37 = vld [vmem:[%s1780_s0 + $0x18] sm:$0xff] }
   0xa   :  { %v26_v18 = vld [vmem:[%s1780_s0 + $0x28] sm:$0xff]  ;;  %v25_v20 = vld [vmem:[%s1780_s0 + $0x20] sm:$0xff]  ;;  %363 = vmatpush1.msra.mxu0 %v45_v16  ;;  %222 = vmatprep.subr.mxu1 %v22_v17  ;;  %v23_v39 = vld [vmem:[%s1780_s0 + $0x10] sm:$0xff] }
   0xb   :  { %v1398_v21 = vld [vmem:[%s1781_s1] sm:$0xf]  ;;  %364 = vmatprep.subr.mxu0 %v26_v18  ;;  %v110_v23 = vld [vmem:[%s1780_s0 + $0x2c8] sm:$0xf]  ;;  %223 = vmatpush1.msra.mxu1 %v21_v19  ;;  %v108_v42 = vld [vmem:[%s1780_s0 + $0x2b8] sm:$0xf] }
   0xc   :  { %365 = vmatpush1.msra.mxu0 %v25_v20  ;;  %1212 = vmatmul.mubr.msk.f32.vlgmr.msra.gmra.mxu1 %vm127_vm1, %v1398_v21  ;;  %v109_v26 = vld [vmem:[%s1780_s0 + $0x2c0] sm:$0xf]  ;;  %v90_v28 = vld [vmem:[%s1780_s0 + $0x228] sm:$0xff]  ;;  %v107_v44 = vld [vmem:[%s1780_s0 + $0x2b0] sm:$0xf] }
   0xd   :  { %1213 = vmatprep.subr.msk.mxu1 %vm131_vm0, %v104_v22  ;;  %1222 = vmatprep.subr.msk.mxu0 %vm131_vm0, %v110_v23  ;;  %v89_v30 = vld [vmem:[%s1780_s0 + $0x220] sm:$0xff]  ;;  %v70_v32 = vld [vmem:[%s1780_s0 + $0x188] sm:$0xff]  ;;  %v88_v46 = vld [vmem:[%s1780_s0 + $0x218] sm:$0xff] }
   0xe   :  { %1214 = vmatpush1.msk.msra.mxu1 %vm131_vm0, %v103_v24  ;;  %1218 = vmatmul.mubr.msk.f32.vlgmr.msra.gmra.mxu0 %vm127_vm1, %v1398_v21  ;;  %v69_v34 = vld [vmem:[%s1780_s0 + $0x180] sm:$0xff]  ;;  %v50_v36 = vld [vmem:[%s1780_s0 + $0xe8] sm:$0xff]  ;;  %v87_v48 = vld [vmem:[%s1780_s0 + $0x210] sm:$0xff] }
   0xf   :  { %287 = vmatprep.subr.mxu1 %v84_v25  ;;  %1223 = vmatpush1.msk.msra.mxu0 %vm131_vm0, %v109_v26  ;;  %v49_v38 = vld [vmem:[%s1780_s0 + $0xe0] sm:$0xff]  ;;  %v30_v40 = vld [vmem:[%s1780_s0 + $0x48] sm:$0xff]  ;;  %v68_v50 = vld [vmem:[%s1780_s0 + $0x178] sm:$0xff] }
  0x10   :  { %288 = vmatpush1.msra.mxu1 %v83_v27  ;;  %500 = vmatprep.subr.mxu0 %v90_v28  ;;  %v29_v41 = vld [vmem:[%s1780_s0 + $0x40] sm:$0xff]  ;;  %v114_v43 = vld [vmem:[%s1780_s0 + $0x2e8] sm:$0xf]  ;;  %v67_v52 = vld [vmem:[%s1780_s0 + $0x170] sm:$0xff]  ;;  %v1295_v28 = vmov 0  }
  0x11   :  { %289 = vmatprep.subr.mxu1 %v64_v29  ;;  %501 = vmatpush1.msra.mxu0 %v89_v30  ;;  %v113_v45 = vld [vmem:[%s1780_s0 + $0x2e0] sm:$0xf]  ;;  %v94_v47 = vld [vmem:[%s1780_s0 + $0x248] sm:$0xff]  ;;  %v48_v54 = vld [vmem:[%s1780_s0 + $0xd8] sm:$0xff] }
  0x12   :  { %290 = vmatpush1.msra.mxu1 %v63_v31  ;;  %502 = vmatprep.subr.mxu0 %v70_v32  ;;  %v93_v49 = vld [vmem:[%s1780_s0 + $0x240] sm:$0xff]  ;;  %v74_v51 = vld [vmem:[%s1780_s0 + $0x1a8] sm:$0xff]  ;;  %v47_v56 = vld [vmem:[%s1780_s0 + $0xd0] sm:$0xff] }
  0x13   :  { %291 = vmatprep.subr.mxu1 %v44_v33  ;;  %503 = vmatpush1.msra.mxu0 %v69_v34  ;;  %v73_v53 = vld [vmem:[%s1780_s0 + $0x1a0] sm:$0xff]  ;;  %v54_v55 = vld [vmem:[%s1780_s0 + $0x108] sm:$0xff]  ;;  %v28_v58 = vld [vmem:[%s1780_s0 + $0x38] sm:$0xff] }
  0x14   :  { %292 = vmatpush1.msra.mxu1 %v43_v35  ;;  %504 = vmatprep.subr.mxu0 %v50_v36  ;;  %v53_v57 = vld [vmem:[%s1780_s0 + $0x100] sm:$0xff]  ;;  %v34_v59 = vld [vmem:[%s1780_s0 + $0x68] sm:$0xff]  ;;  %v27_v60 = vld [vmem:[%s1780_s0 + $0x30] sm:$0xff] }
  0x15   :  { %293 = vmatprep.subr.mxu1 %v24_v37  ;;  %505 = vmatpush1.msra.mxu0 %v49_v38  ;;  %v33_v61 = vld [vmem:[%s1780_s0 + $0x60] sm:$0xff]  ;;  %v112_v62 = vld [vmem:[%s1780_s0 + $0x2d8] sm:$0xf]  ;;  %v118_v63 = vld [vmem:[%s1780_s0 + $0x308] sm:$0xf] }
  0x16   :  { %294 = vmatpush1.msra.mxu1 %v23_v39  ;;  %506 = vmatprep.subr.mxu0 %v30_v40  ;;  %v111_v0 = vld [vmem:[%s1780_s0 + $0x2d0] sm:$0xf]  ;;  %v117_v1 = vld [vmem:[%s1780_s0 + $0x300] sm:$0xf]  ;;  %v92_v2 = vld [vmem:[%s1780_s0 + $0x238] sm:$0xff] }
  0x17   :  { %327 = vmatprep.mubr.f32.mxu1 %v1294_v3  ;;  %507 = vmatpush1.msra.mxu0 %v29_v41  ;;  %v98_v4 = vld [vmem:[%s1780_s0 + $0x268] sm:$0xff]  ;;  %v91_v5 = vld [vmem:[%s1780_s0 + $0x230] sm:$0xff]  ;;  %v97_v6 = vld [vmem:[%s1780_s0 + $0x260] sm:$0xff] }
  0x18   :  { %540 = vmatprep.mubr.f32.mxu0 %v1294_v3  ;;  %1215 = vmatmul.mubr.msk.f32.vlgmr.msra.gmra.mxu1 %vm127_vm1, %v1398_v21  ;;  %v72_v7 = vld [vmem:[%s1780_s0 + $0x198] sm:$0xff]  ;;  %v78_v8 = vld [vmem:[%s1780_s0 + $0x1c8] sm:$0xff]  ;;  %v71_v9 = vld [vmem:[%s1780_s0 + $0x190] sm:$0xff] }
  0x19   :  { %1219 = vmatprep.subr.msk.mxu1 %vm131_vm0, %v108_v42  ;;  %1224 = vmatmul.mubr.msk.f32.vlgmr.msra.gmra.mxu0 %vm127_vm1, %v1398_v21  ;;  %v77_v10 = vld [vmem:[%s1780_s0 + $0x1c0] sm:$0xff]  ;;  %v52_v11 = vld [vmem:[%s1780_s0 + $0xf8] sm:$0xff]  ;;  %v58_v12 = vld [vmem:[%s1780_s0 + $0x128] sm:$0xff] }
  0x1a   :  { %1228 = vmatprep.subr.msk.mxu0 %vm131_vm0, %v114_v43  ;;  %1220 = vmatpush1.msk.msra.mxu1 %vm131_vm0, %v107_v44  ;;  %v51_v13 = vld [vmem:[%s1780_s0 + $0xf0] sm:$0xff]  ;;  %v57_v14 = vld [vmem:[%s1780_s0 + $0x120] sm:$0xff]  ;;  %v32_v15 = vld [vmem:[%s1780_s0 + $0x58] sm:$0xff] }
  0x1b   :  { %1229 = vmatpush1.msk.msra.mxu0 %vm131_vm0, %v113_v45  ;;  %429 = vmatprep.subr.mxu1 %v88_v46  ;;  %v38_v16 = vld [vmem:[%s1780_s0 + $0x88] sm:$0xff]  ;;  %v31_v17 = vld [vmem:[%s1780_s0 + $0x50] sm:$0xff]  ;;  %v37_v18 = vld [vmem:[%s1780_s0 + $0x80] sm:$0xff] }
  0x1c   :  { %642 = vmatprep.subr.mxu0 %v94_v47  ;;  %430 = vmatpush1.msra.mxu1 %v87_v48  ;;  %v116_v19 = vld [vmem:[%s1780_s0 + $0x2f8] sm:$0xf]  ;;  %v115_v20 = vld [vmem:[%s1780_s0 + $0x2f0] sm:$0xf]  ;;  %v1634_v25 = vld [vmem:[%s1782_s4] sm:$0xf] }
  0x1d   :  { %643 = vmatpush1.msra.mxu0 %v93_v49  ;;  %431 = vmatprep.subr.mxu1 %v68_v50  ;;  %v96_v22 = vld [vmem:[%s1780_s0 + $0x258] sm:$0xff]  ;;  %v95_v23 = vld [vmem:[%s1780_s0 + $0x250] sm:$0xff] }
  0x1e   :  { %644 = vmatprep.subr.mxu0 %v74_v51  ;;  %432 = vmatpush1.msra.mxu1 %v67_v52  ;;  %v76_v24 = vld [vmem:[%s1780_s0 + $0x1b8] sm:$0xff]  ;;  %v75_v26 = vld [vmem:[%s1780_s0 + $0x1b0] sm:$0xff] }
  0x1f   :  { %645 = vmatpush1.msra.mxu0 %v73_v53  ;;  %433 = vmatprep.subr.mxu1 %v48_v54  ;;  %v56_v27 = vld [vmem:[%s1780_s0 + $0x118] sm:$0xff]  ;;  %v55_v29 = vld [vmem:[%s1780_s0 + $0x110] sm:$0xff] }
  0x20   :  { %646 = vmatprep.subr.mxu0 %v54_v55  ;;  %434 = vmatpush1.msra.mxu1 %v47_v56  ;;  %v36_v30 = vld [vmem:[%s1780_s0 + $0x78] sm:$0xff]  ;;  %v35_v31 = vld [vmem:[%s1780_s0 + $0x70] sm:$0xff] }
  0x21   :  { %647 = vmatpush1.msra.mxu0 %v53_v57  ;;  %435 = vmatprep.subr.mxu1 %v28_v58  ;;  %v120_v32 = vld [vmem:[%s1780_s0 + $0x318] sm:$0xf]  ;;  %v119_v33 = vld [vmem:[%s1780_s0 + $0x310] sm:$0xf] }
  0x22   :  { %648 = vmatprep.subr.mxu0 %v34_v59  ;;  %436 = vmatpush1.msra.mxu1 %v27_v60  ;;  %v100_v34 = vld [vmem:[%s1780_s0 + $0x278] sm:$0xff]  ;;  %v99_v35 = vld [vmem:[%s1780_s0 + $0x270] sm:$0xff] }
  0x23   :  { %469 = vmatprep.mubr.f32.mxu1 %v1294_v3  ;;  %649 = vmatpush1.msra.mxu0 %v33_v61  ;;  %v80_v36 = vld [vmem:[%s1780_s0 + $0x1d8] sm:$0xff]  ;;  %v79_v37 = vld [vmem:[%s1780_s0 + $0x1d0] sm:$0xff] }
  0x24   :  { %682 = vmatprep.mubr.f32.mxu0 %v1294_v3  ;;  %1221 = vmatmul.mubr.msk.f32.vlgmr.msra.gmra.mxu1 %vm127_vm1, %v1398_v21  ;;  %v60_v38 = vld [vmem:[%s1780_s0 + $0x138] sm:$0xff]  ;;  %v59_v39 = vld [vmem:[%s1780_s0 + $0x130] sm:$0xff] }
  0x25   :  { %1225 = vmatprep.subr.msk.mxu1 %vm131_vm0, %v112_v62  ;;  %1230 = vmatmul.mubr.msk.f32.vlgmr.msra.gmra.mxu0 %vm127_vm1, %v1398_v21  ;;  %v39_v40 = vld [vmem:[%s1780_s0 + $0x90] sm:$0xff] }
  0x26   :  { %1234 = vmatprep.subr.msk.mxu0 %vm131_vm0, %v118_v63  ;;  %1226 = vmatpush1.msk.msra.mxu1 %vm131_vm0, %v111_v0 }
  0x27   :  { %1235 = vmatpush1.msk.msra.mxu0 %vm131_vm0, %v117_v1  ;;  %571 = vmatprep.subr.mxu1 %v92_v2 }
  0x28   :  { %784 = vmatprep.subr.mxu0 %v98_v4  ;;  %572 = vmatpush1.msra.mxu1 %v91_v5  ;;  %v1296_v4 = vmov 1  }
  0x29   :  { %785 = vmatpush1.msra.mxu0 %v97_v6  ;;  %573 = vmatprep.subr.mxu1 %v72_v7 }
  0x2a   :  { %786 = vmatprep.subr.mxu0 %v78_v8  ;;  %574 = vmatpush1.msra.mxu1 %v71_v9 }
  0x2b   :  { %787 = vmatpush1.msra.mxu0 %v77_v10  ;;  %575 = vmatprep.subr.mxu1 %v52_v11 }
  0x2c   :  { %788 = vmatprep.subr.mxu0 %v58_v12  ;;  %576 = vmatpush1.msra.mxu1 %v51_v13 }
  0x2d   :  { %789 = vmatpush1.msra.mxu0 %v57_v14  ;;  %577 = vmatprep.subr.mxu1 %v32_v15  ;;  %v1298_v15 = vmov 2  }
  0x2e   :  { %790 = vmatprep.subr.mxu0 %v38_v16  ;;  %578 = vmatpush1.msra.mxu1 %v31_v17  ;;  %v1044_v16 = vld [vmem:[%s1783_s3] sm:$0xf] }
  0x2f   :  { %611 = vmatprep.mubr.f32.mxu1 %v1294_v3  ;;  %791 = vmatpush1.msra.mxu0 %v37_v18  ;;  %1045 = vst [vmem:[#allocation2 + $0x40] sm:$0xf] %v1044_v16 }
  0x30   :  { %824 = vmatprep.mubr.f32.mxu0 %v1294_v3  ;;  %1227 = vmatmul.mubr.msk.f32.vlgmr.msra.gmra.mxu1 %vm127_vm1, %v1398_v21 }
  0x31   :  { %1231 = vmatprep.subr.msk.mxu1 %vm131_vm0, %v116_v19  ;;  %1236 = vmatmul.mubr.msk.f32.vlgmr.msra.gmra.mxu0 %vm127_vm1, %v1398_v21 }
  0x32   :  { %1232 = vmatpush1.msk.msra.mxu1 %vm131_vm0, %v115_v20  ;;  %753 = vmatprep.mubr.f32.mxu1 %v1294_v3  ;;  %v1046_v20 = vld [vmem:[%s1784_s2] sm:$0xff] }
  0x33   :  { %713 = vmatprep.subr.mxu1 %v96_v22  ;;  %1280 = vset.pattern.permute.xlu0 %v1295_v28  ;;  %v1719_v22 = vld [vmem:[%s1782_s4 + $0x8] sm:$0xff] }
  0x34   :  { %714 = vmatpush1.msra.mxu1 %v95_v23  ;;  %124 = vperm.xlu0 %1280, %v1634_v25   ;;  %v1726_v23 = vld [vmem:[%s1782_s4 + $0x10] sm:$0xff] }
  0x35   :  { %715 = vmatprep.subr.mxu1 %v76_v24  ;;  %1281 = vset.pattern.permute.xlu1 %v1296_v4 }
  0x36   :  { %716 = vmatpush1.msra.mxu1 %v75_v26  ;;  %v1056_v19 = vld [vmem:[#allocation2 + $0x40] sm:$0xf]  ;;  %1272 = vmatprep.mubr.msk.f32.mxu0 %vm1069_vm2, %v1046_v20 }
  0x37   :  { %717 = vmatprep.subr.mxu1 %v56_v27  ;;  %1254 = vmatprep.subr.msk.mxu0 %vm131_vm0, %v1056_v19 }
  0x38   :  { %718 = vmatpush1.msra.mxu1 %v55_v29  ;;  %1284 = vset.pattern.permute.xlu0 %v1296_v4 }
  0x39   :  { %719 = vmatprep.subr.mxu1 %v36_v30  ;;  %1255 = vmatpush3.msk.msra.mxu0 %vm131_vm0, %v1056_v19 }
  0x3a   :  { %720 = vmatpush1.msra.mxu1 %v35_v31 }
  0x3b   :  { %1233 = vmatmul.mubr.msk.f32.vlgmr.msra.gmra.mxu1 %vm127_vm1, %v1398_v21  ;;  %1237 = vmatprep.subr.msk.mxu1 %vm131_vm0, %v120_v32 }
  0x3c   :  { %1238 = vmatpush1.msk.msra.mxu1 %vm131_vm0, %v119_v33  ;;  %895 = vmatprep.mubr.f32.mxu1 %v1294_v3  ;;  %v40_v3 = vld [vmem:[%s1780_s0 + $0x98] sm:$0xff]  ;;  %s1297_s0 = smov 1  }
  0x3d   :  { %855 = vmatprep.subr.mxu1 %v100_v34 }
  0x3e   :  { %856 = vmatpush1.msra.mxu1 %v99_v35 }
  0x3f   :  { %857 = vmatprep.subr.mxu1 %v80_v36 }
  0x40   :  { %858 = vmatpush1.msra.mxu1 %v79_v37 }
  0x41   :  { %859 = vmatprep.subr.mxu1 %v60_v38 }
  0x42   :  { %860 = vmatpush1.msra.mxu1 %v59_v39 }
  0x43   :  { %861 = vmatprep.subr.mxu1 %v40_v3 }
  0x44   :  { %862 = vmatpush1.msra.mxu1 %v39_v40 }
  0x45   :  { %1239 = vmatmul.mubr.msk.f32.vlgmr.msra.gmra.mxu1 %vm127_vm1, %v1398_v21 }
  0xaf   :  { %v1691_v42 = vpop.permute.xlu0 %124 }
  0xcc   :  { %v258_v41 = vpop.f32.mrf.mxu1 }
  0xcd   :  { %v259_v44 = vadd.f32 %v258_v41, %v1691_v42 }
  0xce   :  { %v260_v43 = vpop.f32.mrf.mxu1  ;;  %v400_v24 = vpop.f32.mrf.mxu0 }
  0xcf   :  { %v261_v45 = vadd.f32 %v260_v43, %v1691_v42  ;;  %v913_v47 = vmul.f32 %v259_v44, %v259_v44  ;;  %v902_v48 = vsel %vm131_vm0, %v259_v44, 0.0  ;;  %v401_v3 = vadd.f32 %v400_v24, %v1691_v42 }
  0xd0   :  { %v402_v26 = vpop.f32.mrf.mxu0 }
  0xd1   :  { %v914_v46 = vmul.f32 %v261_v45, %v261_v45  ;;  %v903_v49 = vsel %vm131_vm0, %v261_v45, 0.0  ;;  %v917_v21 = vsel %vm131_vm0, %v913_v47, 0.0  ;;  %v403_v40 = vadd.f32 %v402_v26, %v1691_v42 }
  0xd2   :  { %v904_v53 = vadd.f32 %v903_v49, %v902_v48 }
  0xd3   :  { %v918_v51 = vsel %vm131_vm0, %v914_v46, 0.0 }
  0xd4   :  { %v919_v59 = vadd.f32 %v918_v51, %v917_v21 }
  0xd8   :  { %v329_v50 = vpop.f32.mrf.mxu1 }
  0xd9   :  { %v330_v52 = vadd.f32 %v329_v50, %v1691_v42 }
  0xda   :  { %v331_v54 = vpop.f32.mrf.mxu1 }
  0xdb   :  { %v905_v55 = vsel %vm131_vm0, %v330_v52, 0.0  ;;  %v915_v56 = vmul.f32 %v330_v52, %v330_v52  ;;  %v332_v57 = vadd.f32 %v331_v54, %v1691_v42 }
  0xdc   :  { %v906_v58 = vadd.f32 %v905_v55, %v904_v53 }
  0xdd   :  { %v916_v60 = vmul.f32 %v332_v57, %v332_v57  ;;  %v907_v61 = vsel %vm131_vm0, %v332_v57, 0.0  ;;  %v920_v62 = vsel %vm131_vm0, %v915_v56, 0.0 }
  0xde   :  { %v908_v63 = vadd.f32 %v907_v61, %v906_v58  ;;  %v921_v0 = vadd.f32 %v920_v62, %v919_v59 }
  0xdf   :  { %v922_v1 = vsel %vm131_vm0, %v916_v60, 0.0 }
  0xe0   :  { %909 = vadd.xlane.f32.xlu0 %v908_v63  ;;  %v923_v2 = vadd.f32 %v922_v1, %v921_v0 }
  0xe2   :  { %924 = vadd.xlane.f32.xlu1 %v923_v2 }
  0xf6   :  { %1182 = vperm.xlu0 %1284, %v1719_v22  }
  0xfa   :  { %1287 = vset.pattern.permute.xlu0 %v1298_v15 }
 0x169   :  { %v910_v5 = vpop.xlane.xlu0 %909 }
 0x16a   :  { %v912_v6 = vmul.f32 0.001953125, %v910_v5 }
 0x16b   :  { %v925_v7 = vpop.xlane.xlu1 %924 }
 0x16c   :  { %v927_v8 = vmul.f32 %v912_v6, %v912_v6  ;;  %v926_v9 = vmul.f32 0.001953125, %v925_v7 }
 0x16e   :  { %v928_v10 = vsub.f32 %v926_v9, %v927_v8 }
 0x170   :  { %v929_v11 = vadd.f32 1e-05, %v928_v10 }
 0x172   :  { %1288 = vrsqrt.f32 %v929_v11 }
 0x17f   :  { %v1289_v12 = vpop.eup %1288 }
 0x180   :  { %v931_v13 = vmul.f32 %v1289_v12, %v1634_v25 }
 0x182   :  { %v932_v14 = vmul.f32 %v931_v13, %v912_v6 }
 0x184   :  { %934 = vrot.lane.b32.xlu1 %v932_v14, %s1297_s0 }
 0x188   :  { %940 = vperm.xlu1 %1281, %v931_v13  }
 0x18c   :  { %1282 = vset.pattern.permute.xlu1 %v1298_v15 }
 0x1f6   :  { %v935_v17 = vpop.permute.xlu1 %934 }
 0x1f7   :  { %v937_v18 = vsub.f32 %v1634_v25, %v935_v17  ;;  %v471_v25 = vpop.f32.mrf.mxu1 }
 0x1f8   :  { %v472_v44 = vadd.f32 %v471_v25, %v1691_v42 }
 0x1f9   :  { %961 = vperm.xlu1 %1282, %v937_v18   ;;  %v473_v27 = vpop.f32.mrf.mxu1 }
 0x1fa   :  { %v474_v46 = vadd.f32 %v473_v27, %v1691_v42 }
 0x1fb   :  { %v613_v29 = vpop.f32.mrf.mxu1 }
 0x1fc   :  { %v614_v21 = vadd.f32 %v613_v29, %v1691_v42 }
 0x1fd   :  { %1283 = vset.pattern.permute.xlu1 %v1295_v28  ;;  %v542_v28 = vpop.f32.mrf.mxu0  ;;  %v615_v31 = vpop.f32.mrf.mxu1 }
 0x1fe   :  { %1061 = vperm.xlu1 %1283, %v1719_v22   ;;  %v543_v41 = vadd.f32 %v542_v28, %v1691_v42  ;;  %v616_v53 = vadd.f32 %v615_v31, %v1691_v42 }
 0x1ff   :  { %v544_v30 = vpop.f32.mrf.mxu0  ;;  %v755_v33 = vpop.f32.mrf.mxu1 }
 0x200   :  { %v545_v43 = vadd.f32 %v544_v30, %v1691_v42  ;;  %v756_v54 = vadd.f32 %v755_v33, %v1691_v42 }
 0x201   :  { %v684_v32 = vpop.f32.mrf.mxu0  ;;  %v757_v35 = vpop.f32.mrf.mxu1 }
 0x202   :  { %1066 = vperm.xlu1 %1283, %v1726_v23   ;;  %v685_v45 = vadd.f32 %v684_v32, %v1691_v42  ;;  %v758_v55 = vadd.f32 %v757_v35, %v1691_v42 }
 0x203   :  { %v686_v34 = vpop.f32.mrf.mxu0  ;;  %v897_v37 = vpop.f32.mrf.mxu1 }
 0x204   :  { %v687_v47 = vadd.f32 %v686_v34, %v1691_v42  ;;  %v941_v48 = vpop.permute.xlu1 %940  ;;  %v898_v51 = vadd.f32 %v897_v37, %v1691_v42 }
 0x205   :  { %v826_v36 = vpop.f32.mrf.mxu0  ;;  %v899_v39 = vpop.f32.mrf.mxu1  ;;  %v953_v60 = vmul.f32 %v941_v48, %v756_v54  ;;  %v954_v61 = vmul.f32 %v941_v48, %v758_v55  ;;  %v951_v62 = vmul.f32 %v941_v48, %v685_v45  ;;  %v949_v0 = vmul.f32 %v941_v48, %v614_v21 }
 0x206   :  { %1285 = vset.pattern.permute.xlu1 %v1296_v4  ;;  %v827_v49 = vadd.f32 %v826_v36, %v1691_v42  ;;  %v900_v52 = vadd.f32 %v899_v39, %v1691_v42  ;;  %v957_v56 = vmul.f32 %v941_v48, %v898_v51  ;;  %v952_v63 = vmul.f32 %v941_v48, %v687_v47 }
 0x207   :  { %1186 = vperm.xlu1 %1285, %v1726_v23   ;;  %v828_v38 = vpop.f32.mrf.mxu0  ;;  %v950_v1 = vmul.f32 %v941_v48, %v616_v53  ;;  %v947_v2 = vmul.f32 %v941_v48, %v543_v41  ;;  %v948_v4 = vmul.f32 %v941_v48, %v545_v43  ;;  %v945_v6 = vmul.f32 %v941_v48, %v472_v44 }
 0x208   :  { %v829_v50 = vadd.f32 %v828_v38, %v1691_v42  ;;  %v958_v57 = vmul.f32 %v941_v48, %v900_v52  ;;  %v955_v58 = vmul.f32 %v941_v48, %v827_v49  ;;  %v946_v7 = vmul.f32 %v941_v48, %v474_v46 }
 0x209   :  { %v1749_v8 = vmul.f32 %v941_v48, %v401_v3  ;;  %v1751_v9 = vmul.f32 %v941_v48, %v403_v40 }
 0x20a   :  { %v956_v59 = vmul.f32 %v941_v48, %v829_v50 }
 0x20b   :  { %1286 = vset.pattern.permute.xlu1 %v1298_v15 }
 0x274   :  { %v1747_v5 = vpop.permute.xlu1 %961 }
 0x275   :  { %v978_v42 = vadd.f32 %v1747_v5, %v957_v56  ;;  %v979_v10 = vadd.f32 %v1747_v5, %v958_v57  ;;  %v976_v11 = vadd.f32 %v1747_v5, %v955_v58  ;;  %v977_v12 = vadd.f32 %v1747_v5, %v956_v59 }
 0x276   :  { %v974_v13 = vadd.f32 %v1747_v5, %v953_v60  ;;  %v975_v14 = vadd.f32 %v1747_v5, %v954_v61  ;;  %v972_v15 = vadd.f32 %v1747_v5, %v951_v62  ;;  %v973_v16 = vadd.f32 %v1747_v5, %v952_v63 }
 0x277   :  { %vm994_vm3 = vcmp.ge.f32.partialorder %v978_v42, 0.0  ;;  %vm995_vm4 = vcmp.ge.f32.partialorder %v979_v10, 0.0  ;;  %v1010_v17 = vmul.f32 0.3, %v978_v42  ;;  %v1011_v18 = vmul.f32 0.3, %v979_v10 }
 0x278   :  { %vm992_vm5 = vcmp.ge.f32.partialorder %v976_v11, 0.0  ;;  %vm993_vm6 = vcmp.ge.f32.partialorder %v977_v12, 0.0  ;;  %v1008_v19 = vmul.f32 0.3, %v976_v11  ;;  %v1009_v20 = vmul.f32 0.3, %v977_v12 }
 0x279   :  { %v1026_v24 = vsel %vm994_vm3, %v978_v42, %v1010_v17  ;;  %v1027_v25 = vsel %vm995_vm4, %v979_v10, %v1011_v18  ;;  %vm990_vm7 = vcmp.ge.f32.partialorder %v974_v13, 0.0  ;;  %vm991_vm8 = vcmp.ge.f32.partialorder %v975_v14, 0.0 }
 0x27a   :  { %1042 = vst [vmem:[#allocation2 + $0x38] sm:$0xf] %v1026_v24  ;;  %1043 = vst [vmem:[#allocation2 + $0x3c] sm:$0xf] %v1027_v25  ;;  %v1024_v26 = vsel %vm992_vm5, %v976_v11, %v1008_v19  ;;  %v1025_v27 = vsel %vm993_vm6, %v977_v12, %v1009_v20  ;;  %v1006_v28 = vmul.f32 0.3, %v974_v13  ;;  %v970_v34 = vadd.f32 %v1747_v5, %v949_v0 }
 0x27b   :  { %v1007_v29 = vmul.f32 0.3, %v975_v14  ;;  %1040 = vst [vmem:[#allocation2 + $0x30] sm:$0xf] %v1024_v26  ;;  %1041 = vst [vmem:[#allocation2 + $0x34] sm:$0xf] %v1025_v27  ;;  %v971_v35 = vadd.f32 %v1747_v5, %v950_v1  ;;  %v968_v38 = vadd.f32 %v1747_v5, %v947_v2  ;;  %v969_v39 = vadd.f32 %v1747_v5, %v948_v4 }
 0x27c   :  { %vm988_vm9 = vcmp.ge.f32.partialorder %v972_v15, 0.0  ;;  %vm989_vm10 = vcmp.ge.f32.partialorder %v973_v16, 0.0  ;;  %v1004_v30 = vmul.f32 0.3, %v972_v15  ;;  %v1005_v31 = vmul.f32 0.3, %v973_v16 }
 0x27d   :  { %v1022_v32 = vsel %vm990_vm7, %v974_v13, %v1006_v28  ;;  %v1023_v33 = vsel %vm991_vm8, %v975_v14, %v1007_v29  ;;  %vm986_vm11 = vcmp.ge.f32.partialorder %v970_v34, 0.0  ;;  %vm987_vm12 = vcmp.ge.f32.partialorder %v971_v35, 0.0  ;;  %v1047_v4 = vld [vmem:[%s1784_s2 + $0x8] sm:$0xff]  ;;  %v1183_v13 = vpop.permute.xlu0 %1182 }
 0x27e   :  { %1038 = vst [vmem:[#allocation2 + $0x28] sm:$0xf] %v1022_v32  ;;  %1039 = vst [vmem:[#allocation2 + $0x2c] sm:$0xf] %v1023_v33  ;;  %v1020_v36 = vsel %vm988_vm9, %v972_v15, %v1004_v30  ;;  %v1021_v37 = vsel %vm989_vm10, %v973_v16, %v1005_v31  ;;  %v1002_v3 = vmul.f32 0.3, %v970_v34  ;;  %v966_v46 = vadd.f32 %v1747_v5, %v945_v6 }
 0x27f   :  { %1036 = vst [vmem:[#allocation2 + $0x20] sm:$0xf] %v1020_v36  ;;  %1037 = vst [vmem:[#allocation2 + $0x24] sm:$0xf] %v1021_v37  ;;  %v1003_v40 = vmul.f32 0.3, %v971_v35  ;;  %v967_v47 = vadd.f32 %v1747_v5, %v946_v7  ;;  %v964_v51 = vadd.f32 %v1747_v5, %v1749_v8  ;;  %v965_v52 = vadd.f32 %v1747_v5, %v1751_v9  ;;  %v1062_v5 = vpop.permute.xlu1 %1061 }
 0x280   :  { %vm984_vm13 = vcmp.ge.f32.partialorder %v968_v38, 0.0  ;;  %vm985_vm14 = vcmp.ge.f32.partialorder %v969_v39, 0.0  ;;  %v1000_v41 = vmul.f32 0.3, %v968_v38  ;;  %v1001_v43 = vmul.f32 0.3, %v969_v39 }
 0x281   :  { %v1018_v44 = vsel %vm986_vm11, %v970_v34, %v1002_v3  ;;  %v1019_v45 = vsel %vm987_vm12, %v971_v35, %v1003_v40  ;;  %v1055_v48 = vld [vmem:[#allocation2 + $0x38] sm:$0xff]  ;;  %vm982_vm15 = vcmp.ge.f32.partialorder %v966_v46, 0.0  ;;  %vm983_vm0 = vcmp.ge.f32.partialorder %v967_v47, 0.0 }
 0x282   :  { %1034 = vst [vmem:[#allocation2 + $0x18] sm:$0xf] %v1018_v44  ;;  %1035 = vst [vmem:[#allocation2 + $0x1c] sm:$0xf] %v1019_v45  ;;  %v1016_v49 = vsel %vm984_vm13, %v968_v38, %v1000_v41  ;;  %v1017_v50 = vsel %vm985_vm14, %v969_v39, %v1001_v43  ;;  %1256 = vmatprep.subr.mxu0 %v1055_v48  ;;  %v1054_v21 = vld [vmem:[#allocation2 + $0x30] sm:$0xff]  ;;  %vm980_vm1 = vcmp.ge.f32.partialorder %v964_v51, 0.0 }
 0x283   :  { %1032 = vst [vmem:[#allocation2 + $0x10] sm:$0xf] %v1016_v49  ;;  %1033 = vst [vmem:[#allocation2 + $0x14] sm:$0xf] %v1017_v50  ;;  %v998_v53 = vmul.f32 0.3, %v966_v46  ;;  %1257 = vmatpush3.msra.mxu0 %v1055_v48  ;;  %v1067_v6 = vpop.permute.xlu1 %1066 }
 0x284   :  { %v999_v54 = vmul.f32 0.3, %v967_v47  ;;  %vm981_vm3 = vcmp.ge.f32.partialorder %v965_v52, 0.0  ;;  %v996_v55 = vmul.f32 0.3, %v964_v51  ;;  %1258 = vmatprep.subr.mxu0 %v1054_v21 }
 0x285   :  { %v1014_v56 = vsel %vm982_vm15, %v966_v46, %v998_v53  ;;  %v997_v57 = vmul.f32 0.3, %v965_v52  ;;  %1259 = vmatpush3.msra.mxu0 %v1054_v21  ;;  %v1053_v58 = vld [vmem:[#allocation2 + $0x28] sm:$0xff] }
 0x286   :  { %v1015_v59 = vsel %vm983_vm0, %v967_v47, %v999_v54  ;;  %1030 = vst [vmem:[#allocation2 + $0x8] sm:$0xf] %v1014_v56  ;;  %v1012_v60 = vsel %vm980_vm1, %v964_v51, %v996_v55  ;;  %1260 = vmatprep.subr.mxu0 %v1053_v58  ;;  %v1052_v62 = vld [vmem:[#allocation2 + $0x20] sm:$0xff] }
 0x287   :  { %1031 = vst [vmem:[#allocation2 + $0xc] sm:$0xf] %v1015_v59  ;;  %v1013_v61 = vsel %vm981_vm3, %v965_v52, %v997_v57  ;;  %1028 = vst [vmem:[#allocation2] sm:$0xf] %v1012_v60  ;;  %1261 = vmatpush3.msra.mxu0 %v1053_v58  ;;  %v1187_v12 = vpop.permute.xlu1 %1186 }
 0x288   :  { %1029 = vst [vmem:[#allocation2 + $0x4] sm:$0xf] %v1013_v61  ;;  %1262 = vmatprep.subr.mxu0 %v1052_v62 }
 0x289   :  { %1263 = vmatpush3.msra.mxu0 %v1052_v62  ;;  %v1051_v63 = vld [vmem:[#allocation2 + $0x18] sm:$0xff] }
 0x28a   :  { %1264 = vmatprep.subr.mxu0 %v1051_v63  ;;  %v1050_v0 = vld [vmem:[#allocation2 + $0x10] sm:$0xff] }
 0x28b   :  { %1265 = vmatpush3.msra.mxu0 %v1051_v63 }
 0x28c   :  { %1266 = vmatprep.subr.mxu0 %v1050_v0 }
 0x28d   :  { %1267 = vmatpush3.msra.mxu0 %v1050_v0 }
 0x28e   :  { %v1049_v1 = vld [vmem:[#allocation2 + $0x8] sm:$0xff] }
 0x28f   :  { %1268 = vmatprep.subr.mxu0 %v1049_v1  ;;  %v1048_v2 = vld [vmem:[#allocation2] sm:$0xff] }
 0x290   :  { %1269 = vmatpush3.msra.mxu0 %v1049_v1 }
 0x291   :  { %1270 = vmatprep.subr.mxu0 %v1048_v2 }
 0x292   :  { %1271 = vmatpush3.msra.mxu0 %v1048_v2 }
 0x293   :  { %1273 = vmatmul.mubr.msk.f32.vlgmr.msra.gmra.mxu0 %vm1069_vm2, %v1047_v4 }
 0x353   :  { %v1274_v7 = vpop.f32.mrf.mxu0 }
 0x354   :  { %v1151_v8 = vadd.f32 %v1274_v7, %v1067_v6 }
 0x355   :  { %v1145_v9 = vpop.f32.mrf.mxu0 }
 0x356   :  { %v1146_v42 = vadd.f32 %v1145_v9, %v1062_v5  ;;  %1156 = vadd.xlane.f32.xlu1 %v1151_v8  ;;  %v1162_v10 = vmul.f32 %v1151_v8, %v1151_v8 }
 0x358   :  { %1154 = vadd.xlane.f32.xlu0 %v1146_v42  ;;  %v1161_v11 = vmul.f32 %v1146_v42, %v1146_v42 }
 0x35c   :  { %1165 = vadd.xlane.f32.xlu0 %v1162_v10 }
 0x360   :  { %1163 = vadd.xlane.f32.xlu0 %v1161_v11 }
 0x367   :  { %1192 = vperm.xlu1 %1286, %v1719_v22  }
 0x376   :  { %1196 = vperm.xlu0 %1287, %v1726_v23  }
 0x3df   :  { %v1157_v14 = vpop.xlane.xlu1 %1156 }
 0x3e0   :  { %v1160_v16 = vmul.f32 0.0078125, %v1157_v14 }
 0x3e1   :  { %v1155_v15 = vpop.xlane.xlu0 %1154 }
 0x3e2   :  { %v1170_v18 = vmul.f32 %v1160_v16, %v1160_v16  ;;  %v1159_v19 = vmul.f32 0.0078125, %v1155_v15  ;;  %v1174_v22 = vsub.f32 %v1151_v8, %v1160_v16 }
 0x3e3   :  { %v1193_v37 = vpop.permute.xlu1 %1192 }
 0x3e4   :  { %v1169_v26 = vmul.f32 %v1159_v19, %v1159_v19  ;;  %v1173_v32 = vsub.f32 %v1146_v42, %v1159_v19 }
 0x3e5   :  { %v1166_v17 = vpop.xlane.xlu0 %1165 }
 0x3e6   :  { %v1168_v20 = vmul.f32 0.0078125, %v1166_v17 }
 0x3e8   :  { %v1172_v24 = vsub.f32 %v1168_v20, %v1170_v18 }
 0x3e9   :  { %v1164_v25 = vpop.xlane.xlu0 %1163 }
 0x3ea   :  { %v1176_v27 = vadd.f32 1e-05, %v1172_v24  ;;  %v1167_v28 = vmul.f32 0.0078125, %v1164_v25 }
 0x3ec   :  { %1290 = vrsqrt.f32 %v1176_v27  ;;  %v1171_v29 = vsub.f32 %v1167_v28, %v1169_v26 }
 0x3ee   :  { %v1175_v30 = vadd.f32 1e-05, %v1171_v29 }
 0x3f0   :  { %1292 = vrsqrt.f32 %v1175_v30 }
 0x3f1   :  { %v1197_v36 = vpop.permute.xlu0 %1196 }
 0x3f9   :  { %v1291_v23 = vpop.eup %1290 }
 0x3fa   :  { %v1180_v31 = vmul.f32 %v1291_v23, %v1174_v22 }
 0x3fc   :  { %v1190_v34 = vmul.f32 %v1187_v12, %v1180_v31 }
 0x3fd   :  { %v1293_v33 = vpop.eup %1292 }
 0x3fe   :  { %v1179_v35 = vmul.f32 %v1293_v33, %v1173_v32  ;;  %v1200_v39 = vadd.f32 %v1197_v36, %v1190_v34 }
 0x400   :  { %v1189_v38 = vmul.f32 %v1183_v13, %v1179_v35 }
 0x402   :  { %v1199_v3 = vadd.f32 %v1193_v37, %v1189_v38 }
 0x404   :  { %v1201_v40 = vadd.f32 %v1200_v39, %v1199_v3 }
 0x406   :  { %vm1202_vm2 = vcmp.ge.f32.partialorder %v1201_v40, 0.0  ;;  %v1203_v41 = vmul.f32 0.3, %v1201_v40 }
 0x408   :  { %v1204_v43 = vsel %vm1202_vm2, %v1201_v40, %v1203_v41 }
 0x409   :  { %1205 = vst [vmem:[%s1785_s5] sm:$0xff] %v1204_v43 }

</bundles_post_ra>
